<compile_context>
chip_gen: v7x
topology: tpu7x:2x2x1
jax: 0.10.0
libtpu: 0.0.40
codegen_flags: <defaults>
</compile_context>

<pallas_src>
import math
from functools import partial

import jax
import jax.numpy as jnp
from jax import lax
from jax.experimental import pallas as pl
from jax.experimental.pallas import tpu as pltpu

_SQRT_2 = math.sqrt(2.0)


def _gelu_exact(x):
    # BERT default hidden_act = "gelu" (exact erf form), matches torch nn.GELU default.
    return 0.5 * x * (1.0 + lax.erf(x / _SQRT_2))


def mlm_head_kernel(x_ref, w1_ref, b1_ref, g_ref, beta_ref, w2_ref, b2_ref,
                    o_ref, hn_ref):
    """One (row-tile i, vocab-tile j) grid cell of the fused MLM head.

    x_ref:   (tm, H)  bf16 activation row tile
    w1_ref:  (H, H)   bf16 transform dense weight (resident)
    b1_ref:  (1, H)   f32  transform dense bias
    g_ref:   (1, H)   f32  layernorm gamma
    beta_ref:(1, H)   f32  layernorm beta
    w2_ref:  (H, tn)  bf16 decoder weight vocab tile (streamed)
    b2_ref:  (1, tn)  f32  decoder bias vocab tile
    o_ref:   (tm, tn) f32  logits tile
    hn_ref:  (tm, H)  bf16 VMEM scratch caching the transform output across j
    """
    j = pl.program_id(1)

    # Transform is independent of the vocab tile: compute once per row tile.
    @pl.when(j == 0)
    def _():
        h = jnp.dot(x_ref[...], w1_ref[...],
                    preferred_element_type=jnp.float32)          # MXU, bf16 in / f32 acc
        h = h + b1_ref[...]
        h = _gelu_exact(h)
        # LayerNorm (biased variance, eps=1e-12)
        mean = jnp.mean(h, axis=-1, keepdims=True)
        centered = h - mean
        var = jnp.mean(centered * centered, axis=-1, keepdims=True)
        inv = lax.rsqrt(var + 1e-12)
        hn = centered * inv * g_ref[...] + beta_ref[...]
        hn_ref[...] = hn.astype(hn_ref.dtype)                    # cache bf16 for the MXU

    # Decoder matmul against the current vocab tile.
    logits = jnp.dot(hn_ref[...], w2_ref[...],
                     preferred_element_type=jnp.float32) + b2_ref[...]
    o_ref[...] = logits.astype(o_ref.dtype)


@partial(jax.jit, static_argnames=("tm", "tn"))
def bert_only_mlm_head(x, w1, b1, gamma, beta, w2, b2, *, tm=256, tn=2048):
    B, S, H = x.shape
    V = w2.shape[1]
    M = B * S

    tm = min(tm, M)
    tn = min(tn, V)

    # bf16 for matmul operands (halves HBM traffic for the dominant W2 stream and the
    # x tiles); biases / LN params stay f32.
    x2 = x.reshape(M, H).astype(jnp.bfloat16)
    w1b = w1.astype(jnp.bfloat16)
    w2b = w2.astype(jnp.bfloat16)
    b1f = b1.reshape(1, H).astype(jnp.float32)
    gf = gamma.reshape(1, H).astype(jnp.float32)
    betaf = beta.reshape(1, H).astype(jnp.float32)
    b2f = b2.reshape(1, V).astype(jnp.float32)

    grid = (pl.cdiv(M, tm), pl.cdiv(V, tn))

    # Rough VMEM budget: double-buffered streaming tiles + resident params + hn scratch.
    est = (2 * (tm * H * 2 + H * tn * 2 + tn * 4 + tm * tn * 4)
           + H * H * 2 + 3 * H * 4 + tm * H * 2)
    vmem_limit = int(min(max(2 * est, 16 * 1024 * 1024), 64 * 1024 * 1024))

    out = pl.pallas_call(
        mlm_head_kernel,
        out_shape=jax.ShapeDtypeStruct((M, V), jnp.float32),
        grid_spec=pltpu.PrefetchScalarGridSpec(
            num_scalar_prefetch=0,
            grid=grid,
            in_specs=[
                pl.BlockSpec((tm, H), lambda i, j: (i, 0)),   # x row tile
                pl.BlockSpec((H, H), lambda i, j: (0, 0)),    # W1 (resident)
                pl.BlockSpec((1, H), lambda i, j: (0, 0)),    # b1
                pl.BlockSpec((1, H), lambda i, j: (0, 0)),    # gamma
                pl.BlockSpec((1, H), lambda i, j: (0, 0)),    # beta
                pl.BlockSpec((H, tn), lambda i, j: (0, j)),   # W2 vocab tile (streamed)
                pl.BlockSpec((1, tn), lambda i, j: (0, j)),   # b2 vocab tile
            ],
            out_specs=pl.BlockSpec((tm, tn), lambda i, j: (i, j)),
            scratch_shapes=[pltpu.VMEM((tm, H), jnp.bfloat16)],
        ),
        compiler_params=pltpu.CompilerParams(
            dimension_semantics=("parallel", "arbitrary"),
            vmem_limit_bytes=vmem_limit),
    )(x2, w1b, b1f, gf, betaf, w2b, b2f)

    return out.reshape(B, S, V)


def reference_jax(x, w1, b1, gamma, beta, w2, b2):
    h = x.astype(jnp.float32) @ w1 + b1
    h = 0.5 * h * (1.0 + lax.erf(h / _SQRT_2))
    mean = jnp.mean(h, axis=-1, keepdims=True)
    var = jnp.mean((h - mean) ** 2, axis=-1, keepdims=True)
    hn = (h - mean) / jnp.sqrt(var + 1e-12) * gamma + beta
    return hn @ w2 + b2


if __name__ == "__main__":
    # Small config: batch=2, seq=8, hidden=32, vocab=128
    B, S, H, V = 2, 8, 32, 128

    key = jax.random.PRNGKey(0)
    k_x, k_w1, k_b1, k_w2, k_b2 = jax.random.split(key, 5)

    x = jax.random.normal(k_x, (B, S, H), dtype=jnp.float32)

    # Deterministic parameter init (synthetic, not a checkpoint load)
    w1 = jax.random.normal(k_w1, (H, H), dtype=jnp.float32) * 0.02
    b1 = jax.random.normal(k_b1, (H,), dtype=jnp.float32) * 0.02
    gamma = jnp.ones((H,), dtype=jnp.float32)
    beta = jnp.zeros((H,), dtype=jnp.float32)
    w2 = jax.random.normal(k_w2, (H, V), dtype=jnp.float32) * 0.02
    b2 = jax.random.normal(k_b2, (V,), dtype=jnp.float32) * 0.02

    out = bert_only_mlm_head(x, w1, b1, gamma, beta, w2, b2)
    out = jax.block_until_ready(out)

    ref = reference_jax(x, w1, b1, gamma, beta, w2, b2)
    assert out.shape == (B, S, V), out.shape
    # Matmul operands run in bf16 on the MXU -> tolerance looser than pure f32.
    assert jnp.allclose(out, ref, atol=2e-2, rtol=2e-2), "mismatch vs reference"

    print("KERNEL_OK")
</pallas_src>

<mosaic_0001>
module attributes {stable_mosaic.version = 11 : i64} {
  func.func @mlm_head_kernel(%arg0: i32, %arg1: i32, %arg2: memref<16x32xbf16, #tpu.memory_space<vmem>>, %arg3: memref<32x32xbf16, #tpu.memory_space<vmem>>, %arg4: memref<1x32xf32, #tpu.memory_space<vmem>>, %arg5: memref<1x32xf32, #tpu.memory_space<vmem>>, %arg6: memref<1x32xf32, #tpu.memory_space<vmem>>, %arg7: memref<32x128xbf16, #tpu.memory_space<vmem>>, %arg8: memref<1x128xf32, #tpu.memory_space<vmem>>, %arg9: memref<16x128xf32, #tpu.memory_space<vmem>>, %arg10: memref<16x32xbf16, #tpu.memory_space<vmem>>) attributes {dimension_semantics = [#tpu.dimension_semantics<parallel>, #tpu.dimension_semantics<arbitrary>], iteration_bounds = array<i64: 1, 1>, scalar_prefetch = 0 : i64, scratch_operands = 1 : i64, tpu.core_type = #tpu.core_type<tc>, window_params = [{transform_indices = @transform_0, window_bounds = array<i64: 16, 32>}, {pipeline_mode = #tpu.pipeline_mode<synchronous>, transform_indices = @transform_1, window_bounds = array<i64: 32, 32>}, {pipeline_mode = #tpu.pipeline_mode<synchronous>, transform_indices = @transform_2, window_bounds = array<i64: 1, 32>}, {pipeline_mode = #tpu.pipeline_mode<synchronous>, transform_indices = @transform_3, window_bounds = array<i64: 1, 32>}, {pipeline_mode = #tpu.pipeline_mode<synchronous>, transform_indices = @transform_4, window_bounds = array<i64: 1, 32>}, {transform_indices = @transform_5, window_bounds = array<i64: 32, 128>}, {transform_indices = @transform_6, window_bounds = array<i64: 1, 128>}, {transform_indices = @transform_7, window_bounds = array<i64: 16, 128>}]} {
    %c0_i32 = arith.constant 0 : i32
    %0 = arith.cmpi eq, %arg1, %c0_i32 : i32
    %1 = arith.extui %0 : i1 to i32
    %c0_i32_0 = arith.constant 0 : i32
    %2 = arith.cmpi ne, %1, %c0_i32_0 : i32
    scf.if %2 {
      %c0_8 = arith.constant 0 : index
      %c0_9 = arith.constant 0 : index
      %10 = vector.load %arg2[%c0_8, %c0_9] : memref<16x32xbf16, #tpu.memory_space<vmem>>, vector<16x32xbf16>
      %c0_10 = arith.constant 0 : index
      %c0_11 = arith.constant 0 : index
      %11 = vector.load %arg3[%c0_10, %c0_11] : memref<32x32xbf16, #tpu.memory_space<vmem>>, vector<32x32xbf16>
      %cst_12 = arith.constant dense<0.000000e+00> : vector<16x32xf32>
      %12 = tpu.matmul %10, %11, %cst_12 {dimension_numbers = #tpu.dot_dimension_numbers<[1], [0], [0], [1], [0, 0, 1, 1], [], []>} : vector<16x32xbf16>, vector<32x32xbf16>, vector<16x32xf32> -> vector<16x32xf32>
      %c0_13 = arith.constant 0 : index
      %c0_14 = arith.constant 0 : index
      %13 = vector.load %arg4[%c0_13, %c0_14] : memref<1x32xf32, #tpu.memory_space<vmem>>, vector<1x32xf32>
      %14 = vector.broadcast %13 : vector<1x32xf32> to vector<16x32xf32>
      %15 = arith.addf %12, %14 : vector<16x32xf32>
      %cst_15 = arith.constant 5.000000e-01 : f32
      %16 = vector.broadcast %cst_15 : f32 to vector<16x32xf32>
      %17 = arith.mulf %16, %15 : vector<16x32xf32>
      %cst_16 = arith.constant 1.41421354 : f32
      %18 = vector.broadcast %cst_16 : f32 to vector<16x32xf32>
      %19 = arith.divf %15, %18 : vector<16x32xf32>
      %20 = math.erf %19 : vector<16x32xf32>
      %cst_17 = arith.constant 1.000000e+00 : f32
      %21 = vector.broadcast %cst_17 : f32 to vector<16x32xf32>
      %22 = arith.addf %21, %20 : vector<16x32xf32>
      %23 = arith.mulf %17, %22 : vector<16x32xf32>
      %cst_18 = arith.constant dense<0.000000e+00> : vector<16xf32>
      %24 = vector.multi_reduction <add>, %23, %cst_18 [1] : vector<16x32xf32> to vector<16xf32>
      %25 = vector.shape_cast %24 : vector<16xf32> to vector<16x1xf32>
      %cst_19 = arith.constant 3.200000e+01 : f32
      %26 = vector.broadcast %cst_19 : f32 to vector<16x1xf32>
      %27 = arith.divf %25, %26 : vector<16x1xf32>
      %28 = vector.broadcast %27 : vector<16x1xf32> to vector<16x32xf32>
      %29 = arith.subf %23, %28 : vector<16x32xf32>
      %30 = arith.mulf %29, %29 : vector<16x32xf32>
      %cst_20 = arith.constant dense<0.000000e+00> : vector<16xf32>
      %31 = vector.multi_reduction <add>, %30, %cst_20 [1] : vector<16x32xf32> to vector<16xf32>
      %32 = vector.shape_cast %31 : vector<16xf32> to vector<16x1xf32>
      %cst_21 = arith.constant 3.200000e+01 : f32
      %33 = vector.broadcast %cst_21 : f32 to vector<16x1xf32>
      %34 = arith.divf %32, %33 : vector<16x1xf32>
      %cst_22 = arith.constant 9.99999996E-13 : f32
      %35 = vector.broadcast %cst_22 : f32 to vector<16x1xf32>
      %36 = arith.addf %34, %35 : vector<16x1xf32>
      %37 = math.rsqrt %36 : vector<16x1xf32>
      %38 = vector.broadcast %37 : vector<16x1xf32> to vector<16x32xf32>
      %39 = arith.mulf %29, %38 : vector<16x32xf32>
      %c0_23 = arith.constant 0 : index
      %c0_24 = arith.constant 0 : index
      %40 = vector.load %arg5[%c0_23, %c0_24] : memref<1x32xf32, #tpu.memory_space<vmem>>, vector<1x32xf32>
      %41 = vector.broadcast %40 : vector<1x32xf32> to vector<16x32xf32>
      %42 = arith.mulf %39, %41 : vector<16x32xf32>
      %c0_25 = arith.constant 0 : index
      %c0_26 = arith.constant 0 : index
      %43 = vector.load %arg6[%c0_25, %c0_26] : memref<1x32xf32, #tpu.memory_space<vmem>>, vector<1x32xf32>
      %44 = vector.broadcast %43 : vector<1x32xf32> to vector<16x32xf32>
      %45 = arith.addf %42, %44 : vector<16x32xf32>
      %46 = arith.truncf %45 : vector<16x32xf32> to vector<16x32xbf16>
      %c0_27 = arith.constant 0 : index
      %c0_28 = arith.constant 0 : index
      %47 = vector.load %arg10[%c0_27, %c0_28] : memref<16x32xbf16, #tpu.memory_space<vmem>>, vector<16x32xbf16>
      tpu.vector_store %arg10[%c0_27, %c0_28], %46 {strides = array<i32>} : memref<16x32xbf16, #tpu.memory_space<vmem>>, vector<16x32xbf16>,
    } else {
    }
    %c0 = arith.constant 0 : index
    %c0_1 = arith.constant 0 : index
    %3 = vector.load %arg10[%c0, %c0_1] : memref<16x32xbf16, #tpu.memory_space<vmem>>, vector<16x32xbf16>
    %c0_2 = arith.constant 0 : index
    %c0_3 = arith.constant 0 : index
    %4 = vector.load %arg7[%c0_2, %c0_3] : memref<32x128xbf16, #tpu.memory_space<vmem>>, vector<32x128xbf16>
    %cst = arith.constant dense<0.000000e+00> : vector<16x128xf32>
    %5 = tpu.matmul %3, %4, %cst {dimension_numbers = #tpu.dot_dimension_numbers<[1], [0], [0], [1], [0, 0, 1, 1], [], []>} : vector<16x32xbf16>, vector<32x128xbf16>, vector<16x128xf32> -> vector<16x128xf32>
    %c0_4 = arith.constant 0 : index
    %c0_5 = arith.constant 0 : index
    %6 = vector.load %arg8[%c0_4, %c0_5] : memref<1x128xf32, #tpu.memory_space<vmem>>, vector<1x128xf32>
    %7 = vector.broadcast %6 : vector<1x128xf32> to vector<16x128xf32>
    %8 = arith.addf %5, %7 : vector<16x128xf32>
    %c0_6 = arith.constant 0 : index
    %c0_7 = arith.constant 0 : index
    %9 = vector.load %arg9[%c0_6, %c0_7] : memref<16x128xf32, #tpu.memory_space<vmem>>, vector<16x128xf32>
    tpu.vector_store %arg9[%c0_6, %c0_7], %8 {strides = array<i32>} : memref<16x128xf32, #tpu.memory_space<vmem>>, vector<16x128xf32>,
    return
  }
  func.func @transform_0(%arg0: i32, %arg1: i32) -> (i32, i32) {
    %c0_i32 = arith.constant 0 : i32
    %c0_i32_0 = arith.constant 0 : i32
    return %arg0, %c0_i32 : i32, i32
  }
  func.func @transform_1(%arg0: i32, %arg1: i32) -> (i32, i32) {
    %c0_i32 = arith.constant 0 : i32
    %c0_i32_0 = arith.constant 0 : i32
    %c0_i32_1 = arith.constant 0 : i32
    return %c0_i32, %c0_i32_0 : i32, i32
  }
  func.func @transform_2(%arg0: i32, %arg1: i32) -> (i32, i32) {
    %c0_i32 = arith.constant 0 : i32
    %c0_i32_0 = arith.constant 0 : i32
    %c0_i32_1 = arith.constant 0 : i32
    return %c0_i32, %c0_i32_0 : i32, i32
  }
  func.func @transform_3(%arg0: i32, %arg1: i32) -> (i32, i32) {
    %c0_i32 = arith.constant 0 : i32
    %c0_i32_0 = arith.constant 0 : i32
    %c0_i32_1 = arith.constant 0 : i32
    return %c0_i32, %c0_i32_0 : i32, i32
  }
  func.func @transform_4(%arg0: i32, %arg1: i32) -> (i32, i32) {
    %c0_i32 = arith.constant 0 : i32
    %c0_i32_0 = arith.constant 0 : i32
    %c0_i32_1 = arith.constant 0 : i32
    return %c0_i32, %c0_i32_0 : i32, i32
  }
  func.func @transform_5(%arg0: i32, %arg1: i32) -> (i32, i32) {
    %c0_i32 = arith.constant 0 : i32
    %c0_i32_0 = arith.constant 0 : i32
    return %c0_i32, %arg1 : i32, i32
  }
  func.func @transform_6(%arg0: i32, %arg1: i32) -> (i32, i32) {
    %c0_i32 = arith.constant 0 : i32
    %c0_i32_0 = arith.constant 0 : i32
    return %c0_i32, %arg1 : i32, i32
  }
  func.func @transform_7(%arg0: i32, %arg1: i32) -> (i32, i32) {
    %c0_i32 = arith.constant 0 : i32
    return %arg0, %arg1 : i32, i32
  }
}

</mosaic_0001>

<bundles_post_ra>
// kernel: bert_only_mlm_head.1
= control target key start
LH: loop header
LB: loop body
LE: loop exit
PB: predicated region body
PF: predicated region fallthrough
CT: control target
= control target key end

     0   :  { %v327_v1 = vmov 0.0   ;;  %vm328_vm0 = vmmov 0   ;;  %s418_s0 = inlined_call_operand.vmem [shape: bf16[16,32], index: 0, kind: input, shape index: {}]   ;;  %s419_s1 = inlined_call_operand.vmem [shape: bf16[32,32], index: 1, kind: input, shape index: {}]   ;;  %s420_s2 = inlined_call_operand.vmem [shape: f32[1,32], index: 2, kind: input, shape index: {}]   ;;  %s421_s3 = inlined_call_operand.vmem [shape: f32[1,32], index: 3, kind: input, shape index: {}]   ;;  %s422_s4 = inlined_call_operand.vmem [shape: f32[1,32], index: 4, kind: input, shape index: {}]   ;;  %s423_s5 = inlined_call_operand.vmem [shape: bf16[32,128], index: 5, kind: input, shape index: {}]   ;;  %s424_s6 = inlined_call_operand.vmem [shape: f32[1,128], index: 6, kind: input, shape index: {}]   ;;  %s425_s7 = inlined_call_operand.hbm [shape: f32[16,128], index: 7, kind: output, shape index: {}]  }
   0x1   :  { %v290_v0 = vld [vmem:[%s419_s1] sm:$0xff]   ;;  %269 = vmatprep.subr.bf16.mxu0 %v327_v1  ;;  %277 = vmatprep.subr.bf16.mxu1 %v327_v1  ;;  %v291_v2 = vld [vmem:[%s419_s1 + $0x8] sm:$0xff]  }
   0x2   :  { %270 = vmatpush3.bf16.msra.mxu0 %v290_v0  ;;  %273 = vmatprep.mubr.msk.bf16.mxu0 %vm328_vm0, %v327_v1 }
   0x3   :  { %271 = vmatprep.subr.bf16.mxu0 %v327_v1  ;;  %281 = vmatprep.mubr.msk.bf16.mxu1 %vm328_vm0, %v327_v1 }
   0x4   :  { %12 = vsyncpa [#allocation4], 0  ;;  %v292_v3 = vld [vmem:[%s418_s0] sm:$0xff]   ;;  %vm62_vm1 = vcmask 261120   ;;  %v294_v34 = vld [vmem:[%s423_s5 + $0x8] sm:$0xff]  }
   0x5   :  { %v252_v4 = vld [vmem:[%s420_s2] ss:$0 sm:$0xff] }
   0x6   :  { %272 = vmatpush3.bf16.msra.mxu0 %v291_v2  ;;  %v293_v33 = vld [vmem:[%s423_s5] sm:$0xff]  }
   0x7   :  { %278 = vmatpush3.bf16.msra.mxu1 %v293_v33  ;;  %v257_v43 = vld [vmem:[%s421_s3] ss:$0 sm:$0xff]  ;;  %s329_s3 = smov [#allocation3]  }
   0x8   :  { %279 = vmatprep.subr.bf16.mxu1 %v327_v1  ;;  %v258_v47 = vld [vmem:[%s422_s4] ss:$0 sm:$0xff]  ;;  %s241_s15 = sshll.u32 %s329_s3, 4  ;;  %s242_s15 = int_to_ptr.vmem [resolvable:$true] %s241_s15 }
   0x9   :  { %274 = vmatmul.mubr.msk.bf16.vlgmr.msra.gmra.mrb[0].mxu0 %vm62_vm1, %v292_v3  ;;  %v259_v53 = vld [vmem:[%s424_s6] ss:$0 sm:$0xff]  ;;  %s303_s4 = scalar_lea.vmem %s242_s15, 256  ;;  %p308_p1 = scmp.lt.s32.totalorder %s242_s15, %s242_s15 }
   0xa   :  { %p304_p0 = scmp.ne.s32.totalorder %s242_s15, %s303_s4  ;;  %p309_p2 = scmp.lt.s32.totalorder %s303_s4, %s303_s4 }
   0xb   :  { %280 = vmatpush3.bf16.msra.mxu1 %v294_v34 }
   0xc   :  { %p310_p3 = por %p309_p2, %p308_p1 }
   0xe   :  { %p311_p4 = pnand %p310_p3, %p304_p0 }
  0xdc   :  { %v100_v5 = vpop.f32.mrb[0].mxu0 }
  0xdd   :  { %v101_v6 = vadd.f32 %v252_v4, %v100_v5  ;;  %v275_v7 = vpop.f32.mrb[1].mxu0 }
  0xde   :  { %v103_v8 = vpop.f32.mrb[2].mxu0 }
  0xdf   :  { %v110_v9 = vmul.f32 0.70710677, %v101_v6  ;;  %v104_v10 = vadd.f32 %v252_v4, %v103_v8  ;;  %v276_v11 = vpop.f32.mrb[3].mxu0  ;;  %v107_v14 = vmul.f32 0.5, %v101_v6 }
  0xe1   :  { %295 = verf.f32 %v110_v9  ;;  %v111_v12 = vmul.f32 0.70710677, %v104_v10  ;;  %v108_v17 = vmul.f32 0.5, %v104_v10 }
  0xe3   :  { %297 = verf.f32 %v111_v12 }
  0xeb   :  { %v296_v13 = vpop.eup %295 }
  0xec   :  { %v114_v15 = vadd.f32 1.0, %v296_v13 }
  0xed   :  { %v298_v16 = vpop.eup %297 }
  0xee   :  { %v116_v18 = vmul.f32 %v114_v15, %v107_v14  ;;  %v115_v19 = vadd.f32 1.0, %v298_v16 }
  0xf0   :  { %v118_v20 = vsel %vm62_vm1, %v116_v18, 0.0  ;;  %v117_v21 = vmul.f32 %v115_v19, %v108_v17 }
  0xf1   :  { %119 = vadd.xlane.f32.xlu0 %v118_v20 }
  0xf2   :  { %v121_v22 = vsel %vm62_vm1, %v117_v21, 0.0 }
  0xf5   :  { %122 = vadd.xlane.f32.xlu0 %v121_v22 }
 0x17e   :  { %v120_v23 = vpop.xlane.xlu0 %119 }
 0x17f   :  { %v125_v24 = vmul.f32 0.03125, %v120_v23 }
 0x181   :  { %v127_v25 = vsub.f32 %v116_v18, %v125_v24 }
 0x182   :  { %v123_v26 = vpop.xlane.xlu0 %122 }
 0x183   :  { %v126_v27 = vmul.f32 0.03125, %v123_v26  ;;  %v129_v28 = vmul.f32 %v127_v25, %v127_v25 }
 0x185   :  { %v128_v29 = vsub.f32 %v117_v21, %v126_v27  ;;  %v131_v30 = vsel %vm62_vm1, %v129_v28, 0.0 }
 0x186   :  { %132 = vadd.xlane.f32.xlu1 %v131_v30 }
 0x187   :  { %v130_v31 = vmul.f32 %v128_v29, %v128_v29 }
 0x189   :  { %v134_v32 = vsel %vm62_vm1, %v130_v31, 0.0 }
 0x18a   :  { %135 = vadd.xlane.f32.xlu1 %v134_v32 }
 0x213   :  { %v133_v35 = vpop.xlane.xlu1 %132 }
 0x214   :  { %v137_v36 = vmul.f32 0.03125, %v133_v35 }
 0x216   :  { %v139_v37 = vadd.f32 1e-12, %v137_v36 }
 0x217   :  { %v136_v38 = vpop.xlane.xlu1 %135 }
 0x218   :  { %299 = vrsqrt.f32 %v139_v37  ;;  %v138_v39 = vmul.f32 0.03125, %v136_v38 }
 0x21a   :  { %v140_v40 = vadd.f32 1e-12, %v138_v39 }
 0x21c   :  { %301 = vrsqrt.f32 %v140_v40 }
 0x222   :  { %v300_v41 = vpop.eup %299 }
 0x223   :  { %v143_v42 = vmul.f32 %v300_v41, %v127_v25 }
 0x225   :  { %v152_v45 = vmul.f32 %v257_v43, %v143_v42 }
 0x226   :  { %v302_v44 = vpop.eup %301 }
 0x227   :  { %v144_v46 = vmul.f32 %v302_v44, %v128_v29  ;;  %v161_v49 = vadd.f32 %v258_v47, %v152_v45 }
 0x229   :  { %v153_v48 = vmul.f32 %v257_v43, %v144_v46 }
 0x22b   :  { %v162_v50 = vadd.f32 %v258_v47, %v153_v48 }
 0x22d   :  { %v163_v51 = vpack.c.bf16 %v162_v50, %v161_v49 }
 0x22f   :  { %164 = vst.msk [vmem:[#allocation2] sm:$0xff] %vm62_vm1, %v163_v51 }
 0x236   :  { %v165_v52 = vld [vmem:[#allocation2] sm:$0xff] }
 0x237   :  { %282 = vmatmul.mubr.msk.bf16.vlgmr.msra.gmra.mrb[0].mxu1 %vm62_vm1, %v165_v52 }
 0x30a   :  { %v227_v54 = vpop.f32.mrb[0].mxu1 }
 0x30b   :  { %v228_v55 = vadd.f32 %v259_v53, %v227_v54  ;;  %v283_v56 = vpop.f32.mrb[1].mxu1 }
 0x30c   :  { %v230_v57 = vpop.f32.mrb[2].mxu1 }
 0x30d   :  { %234 = vst [vmem:[#allocation3] sm:$0xff] %v228_v55  ;;  %v231_v58 = vadd.f32 %v259_v53, %v230_v57  ;;  %v284_v59 = vpop.f32.mrb[3].mxu1 }
 0x30f   :  { %235 = vst [vmem:[#allocation3 + $0x8] sm:$0xff] %v231_v58 }
 0x310   :  { %314 = shalt.err (!%p311_p4)
}
 0x311   :  { %s315_s17 = scalar_lea.hbm %s425_s7, 256 }
 0x312   :  { %p316_p5 = scmp.ne.s32.totalorder %s425_s7, %s315_s17  ;;  %p319_p6 = scmp.lt.u32.totalorder %s315_s17, %s425_s7 }
 0x314   :  { %p321_p7 = pnand %p319_p6, %p316_p5 }
 0x316   :  { %324 = shalt.err (!%p321_p7)
}
 0x317   :  { %s330_s22 = smov 128   ;;  %s331_s23 = smov 8  }
 0x318   :  { %247 = dma.vmem_to_hbm [thread:$0]  %s242_s15, 256, %s425_s7, [#allocation4], %s330_s22, %s330_s22, %s331_s23  }
 0x319   :  { %325 = dma.done.wait [#allocation4], 256  }
 0x31a   :  { %326 = vsyncadd [#allocation4], 4294967040 }
 0x31b   :  { %251 = vsyncpa [#allocation4], 1 }

</bundles_post_ra>
